<compile_context>
chip_gen: v5e
topology: v5e:2x2
jax: 0.10.0
libtpu: 0.0.40
codegen_flags: <defaults>
</compile_context>

<pallas_src>
import functools

import jax
import jax.numpy as jnp
from jax import lax
from jax.experimental import pallas as pl
from jax.experimental.pallas import tpu as pltpu

GAMMA = 1.5
ALPHA = 0.25

_LANES = 128
_MAX_TROWS = 2048          # 2048 * 128 * 4 B = 1 MiB per f32 input block
_N_CORES = 2               # leading "parallel" grid axis (v7x dual-TC)


def _focal_loss_kernel(pred_ref, true_ref, acc_ref, *, gamma, alpha,
                       tiles_per_core, trows, rows_valid, needs_mask):
    i = pl.program_id(1)

    @pl.when(i == 0)
    def _():
        acc_ref[...] = jnp.zeros_like(acc_ref)

    x = pred_ref[...].astype(jnp.float32)   # logits
    z = true_ref[...].astype(jnp.float32)   # targets in [0, 1]

    # Shared transcendental (EUP): e = exp(-|x|).
    e = jnp.exp(-jnp.abs(x))

    # Numerically-stable BCE-with-logits (reduction='none'):
    #   max(x,0) - x*z + log1p(exp(-|x|))
    bce = jnp.maximum(x, 0.0) - x * z + jnp.log1p(e)

    # Stable sigmoid from the same e; approx reciprocal keeps the divide on
    # the EUP slot instead of a Newton-refined VPU divide.
    inv = pl.reciprocal(1.0 + e, approx=True)
    pred_prob = jnp.where(x >= 0.0, 1.0, e) * inv

    # Folded algebra (saves ~5-8 VALU ops/elem):
    #   m = 1 - p_t = p + z*(1 - 2p);  alpha_factor = (1-a) + z*(2a - 1)
    # Clamp m at 0: the approx reciprocal can push p an ulp past 1, and
    # sqrt(negative) would be NaN.
    m = jnp.maximum(pred_prob + z * (1.0 - 2.0 * pred_prob), 0.0)
    alpha_factor = (1.0 - alpha) + z * (2.0 * alpha - 1.0)

    # Specialize half-integer gammas to avoid the exp(gamma*log(m)) lowering.
    if gamma == 1.5:
        modulating_factor = m * jnp.sqrt(m)
    elif gamma == 2.0:
        modulating_factor = m * m
    elif gamma == 1.0:
        modulating_factor = m
    elif gamma == 0.5:
        modulating_factor = jnp.sqrt(m)
    elif gamma == 0.0:
        modulating_factor = jnp.ones_like(m)
    else:
        modulating_factor = jnp.power(m, gamma)

    loss = bce * alpha_factor * modulating_factor   # (trows, 128)

    def fold(v):
        # Fold sublane groups into a vreg-shaped (8, 128) partial sum:
        # pure elementwise VPU adds (vreg-aligned reshape), no per-step
        # cross-lane (XLU) reduction.
        return jnp.sum(v.reshape(trows // 8, 8, _LANES), axis=0)[None, :, :]

    if needs_mask:
        c = pl.program_id(0)
        start_row = (c * tiles_per_core + i) * trows
        is_full = start_row + trows <= rows_valid

        @pl.when(is_full)
        def _():
            acc_ref[...] += fold(loss)

        @pl.when(jnp.logical_not(is_full))
        def _():
            # Ragged last tile (or clamped duplicate tile of the 2-core
            # split): zero every row past the logical end of the data.
            row = start_row + lax.broadcasted_iota(
                jnp.int32, (trows, _LANES), 0)
            acc_ref[...] += fold(jnp.where(row < rows_valid, loss, 0.0))
    else:
        acc_ref[...] += fold(loss)


def _tail_loss_sum(x, z, gamma, alpha):
    # Plain-JAX focal-loss sum for the < 1-chunk ragged tail (≤ 2047 elems).
    x = x.astype(jnp.float32)
    z = z.astype(jnp.float32)
    e = jnp.exp(-jnp.abs(x))
    bce = jnp.maximum(x, 0.0) - x * z + jnp.log1p(e)
    p = jnp.where(x >= 0.0, 1.0, e) / (1.0 + e)
    m = jnp.maximum(p + z * (1.0 - 2.0 * p), 0.0)
    af = (1.0 - alpha) + z * (2.0 * alpha - 1.0)
    return jnp.sum(bce * af * (m ** gamma))


def _sublane_multiple(dtype):
    # Min second-to-last block-dim multiple for the TPU tile of this dtype.
    return {4: 8, 2: 16, 1: 32}.get(jnp.dtype(dtype).itemsize, 8)


def focal_loss(pred, true, gamma=GAMMA, alpha=ALPHA, reduction="mean"):
    """pred, true: float arrays of identical shape (e.g. NCHW logits/targets).

    Returns the scalar focal loss with the wrapped BCEWithLogitsLoss's
    original reduction ('mean' default, 'sum' also supported).  bf16 inputs
    are supported (half the HBM traffic); all math is f32 in-kernel.  Call
    under jax.jit so the wrapper-side slice/reshape fuses into the kernel
    operands (allow_input_fusion) instead of materializing a copy.
    """
    assert pred.shape == true.shape
    gamma = float(gamma)
    alpha = float(alpha)
    total_n = pred.size

    sub = max(_sublane_multiple(pred.dtype), _sublane_multiple(true.dtype))
    chunk = sub * _LANES                      # one minimal (sub, 128) tile
    main_n = (total_n // chunk) * chunk       # static Python ints
    rows = main_n // _LANES                   # multiple of `sub`
    tail_n = total_n - main_n                 # < chunk

    pred_flat = pred.reshape(-1)              # contiguous reshape: no copy
    true_flat = true.reshape(-1)

    total = jnp.float32(0.0)

    if rows > 0:
        trows = min(_MAX_TROWS, rows)         # multiple of `sub`, <= rows
        total_tiles = pl.cdiv(rows, trows)
        tiles_per_core = pl.cdiv(total_tiles, _N_CORES)
        needs_mask = (rows % trows != 0) or (
            _N_CORES * tiles_per_core != total_tiles)

        pred2 = pred_flat[:main_n].reshape(rows, _LANES)
        true2 = true_flat[:main_n].reshape(rows, _LANES)

        def in_map(c, i):
            # Clamp so the (rare) overflow tile of the 2-core split stays in
            # bounds; its contribution is masked to zero inside the kernel.
            return (jnp.minimum(c * tiles_per_core + i, total_tiles - 1), 0)

        kernel = functools.partial(
            _focal_loss_kernel, gamma=gamma, alpha=alpha,
            tiles_per_core=tiles_per_core, trows=trows,
            rows_valid=rows, needs_mask=needs_mask)

        partial_sums = pl.pallas_call(
            kernel,
            out_shape=jax.ShapeDtypeStruct((_N_CORES, 8, _LANES), jnp.float32),
            grid_spec=pltpu.PrefetchScalarGridSpec(
                num_scalar_prefetch=0,
                grid=(_N_CORES, tiles_per_core),
                in_specs=[
                    pl.BlockSpec((trows, _LANES), in_map),
                    pl.BlockSpec((trows, _LANES), in_map),
                ],
                # Per-core lane-dense output block, VMEM-resident across the
                # 'arbitrary' axis (accumulate straight into the output).
                out_specs=pl.BlockSpec((1, 8, _LANES), lambda c, i: (c, 0, 0)),
            ),
            compiler_params=pltpu.CompilerParams(
                dimension_semantics=("parallel", "arbitrary"),
                # Let XLA fuse the wrapper-side slice/reshape into the operand
                # reads: no materialized pad/copy of the inputs.
                allow_input_fusion=[True, True],
                vmem_limit_bytes=32 * 1024 * 1024,
            ),
        )(pred2, true2)
        total = total + jnp.sum(partial_sums)

    if tail_n > 0:
        total = total + _tail_loss_sum(
            pred_flat[main_n:], true_flat[main_n:], gamma, alpha)

    if reduction == "mean":
        return total / total_n
    elif reduction == "sum":
        return total
    # TODO(synk): reduction='none' (full elementwise loss map output) not implemented.
    raise NotImplementedError(f"reduction={reduction!r} not supported")


def _reference(pred, true, gamma=GAMMA, alpha=ALPHA, reduction="mean"):
    x = pred.astype(jnp.float32)
    z = true.astype(jnp.float32)
    bce = jnp.maximum(x, 0.0) - x * z + jnp.log1p(jnp.exp(-jnp.abs(x)))
    p = jax.nn.sigmoid(x)
    p_t = z * p + (1 - z) * (1 - p)
    af = z * alpha + (1 - z) * (1 - alpha)
    mf = (1.0 - p_t) ** gamma
    loss = bce * af * mf
    return jnp.mean(loss) if reduction == "mean" else jnp.sum(loss)


if __name__ == "__main__":
    loss_fn = jax.jit(focal_loss, static_argnames=("gamma", "alpha", "reduction"))

    key = jax.random.PRNGKey(0)
    ks = jax.random.split(key, 8)

    # 1) NCHW detection-head slice; element count is a multiple of the chunk
    #    (no tail, no partial tiles).  'mean' and 'sum' reductions.
    pred = jax.random.normal(ks[0], (2, 4, 16, 16), dtype=jnp.float32)
    true = (jax.random.uniform(ks[1], (2, 4, 16, 16)) > 0.8).astype(jnp.float32)
    out = jax.block_until_ready(loss_fn(pred, true))
    ref = _reference(pred, true)
    assert jnp.allclose(out, ref, rtol=5e-3, atol=1e-6), (out, ref)

    out_s = jax.block_until_ready(loss_fn(pred, true, reduction="sum"))
    ref_s = _reference(pred, true, reduction="sum")
    assert jnp.allclose(out_s, ref_s, rtol=5e-3, atol=1e-5), (out_s, ref_s)

    # 2) Tiny ragged shape (< one sublane chunk -> pure plain-JAX tail path).
    pred_b = jax.random.normal(ks[2], (3, 5, 7, 9), dtype=jnp.float32)
    true_b = (jax.random.uniform(ks[3], (3, 5, 7, 9)) > 0.7).astype(jnp.float32)
    out_b = jax.block_until_ready(loss_fn(pred_b, true_b))
    ref_b = _reference(pred_b, true_b)
    assert jnp.allclose(out_b, ref_b, rtol=5e-3, atol=1e-6), (out_b, ref_b)

    # 3) Ragged shape large enough to exercise the masked edge tile of the
    #    2-axis grid plus a plain-JAX tail.
    pred_c = jax.random.normal(ks[4], (1, 3, 301, 300), dtype=jnp.float32)
    true_c = (jax.random.uniform(ks[5], (1, 3, 301, 300)) > 0.9).astype(jnp.float32)
    out_c = jax.block_until_ready(loss_fn(pred_c, true_c))
    ref_c = _reference(pred_c, true_c)
    assert jnp.allclose(out_c, ref_c, rtol=5e-3, atol=1e-6), (out_c, ref_c)

    # 4) bf16 inputs (16-row sublane tiling, half the HBM bytes).
    pred_d = jax.random.normal(ks[6], (2, 4, 32, 32), dtype=jnp.float32).astype(jnp.bfloat16)
    true_d = (jax.random.uniform(ks[7], (2, 4, 32, 32)) > 0.8).astype(jnp.bfloat16)
    out_d = jax.block_until_ready(loss_fn(pred_d, true_d))
    ref_d = _reference(pred_d, true_d)
    assert jnp.allclose(out_d, ref_d, rtol=1e-2, atol=1e-5), (out_d, ref_d)

    print("KERNEL_OK")
</pallas_src>

<mosaic_0001>
module attributes {stable_mosaic.version = 11 : i64} {
  func.func @_focal_loss_kernel(%arg0: i32, %arg1: i32, %arg2: memref<16x128xf32, #tpu.memory_space<vmem>>, %arg3: memref<16x128xf32, #tpu.memory_space<vmem>>, %arg4: memref<1x8x128xf32, #tpu.memory_space<vmem>>) attributes {dimension_semantics = [#tpu.dimension_semantics<parallel>, #tpu.dimension_semantics<arbitrary>], iteration_bounds = array<i64: 2, 1>, scalar_prefetch = 0 : i64, scratch_operands = 0 : i64, tpu.core_type = #tpu.core_type<tc>, window_params = [{transform_indices = @transform_0, window_bounds = array<i64: 16, 128>}, {transform_indices = @transform_1, window_bounds = array<i64: 16, 128>}, {transform_indices = @transform_2, window_bounds = array<i64: 1, 8, 128>}]} {
    %c0_i32 = arith.constant 0 : i32
    %0 = arith.cmpi eq, %arg1, %c0_i32 : i32
    %1 = arith.extui %0 : i1 to i32
    %c0_i32_0 = arith.constant 0 : i32
    %2 = arith.cmpi ne, %1, %c0_i32_0 : i32
    scf.if %2 {
      %cst_17 = arith.constant 0.000000e+00 : f32
      %49 = vector.broadcast %cst_17 : f32 to vector<1x8x128xf32>
      %c0_18 = arith.constant 0 : index
      %c0_19 = arith.constant 0 : index
      %c0_20 = arith.constant 0 : index
      %50 = vector.load %arg4[%c0_18, %c0_19, %c0_20] : memref<1x8x128xf32, #tpu.memory_space<vmem>>, vector<1x8x128xf32>
      tpu.vector_store %arg4[%c0_18, %c0_19, %c0_20], %49 {strides = array<i32>} : memref<1x8x128xf32, #tpu.memory_space<vmem>>, vector<1x8x128xf32>,
    } else {
    }
    %c0 = arith.constant 0 : index
    %c0_1 = arith.constant 0 : index
    %3 = vector.load %arg2[%c0, %c0_1] : memref<16x128xf32, #tpu.memory_space<vmem>>, vector<16x128xf32>
    %c0_2 = arith.constant 0 : index
    %c0_3 = arith.constant 0 : index
    %4 = vector.load %arg3[%c0_2, %c0_3] : memref<16x128xf32, #tpu.memory_space<vmem>>, vector<16x128xf32>
    %5 = math.absf %3 : vector<16x128xf32>
    %cst = arith.constant 0.000000e+00 : f32
    %6 = vector.broadcast %cst : f32 to vector<16x128xf32>
    %7 = arith.subf %6, %5 : vector<16x128xf32>
    %8 = math.exp %7 : vector<16x128xf32>
    %cst_4 = arith.constant 0.000000e+00 : f32
    %9 = vector.broadcast %cst_4 : f32 to vector<16x128xf32>
    %10 = arith.maximumf %3, %9 : vector<16x128xf32>
    %11 = arith.mulf %3, %4 : vector<16x128xf32>
    %12 = arith.subf %10, %11 : vector<16x128xf32>
    %13 = math.log1p %8 : vector<16x128xf32>
    %14 = arith.addf %12, %13 : vector<16x128xf32>
    %cst_5 = arith.constant 1.000000e+00 : f32
    %15 = vector.broadcast %cst_5 : f32 to vector<16x128xf32>
    %16 = arith.addf %15, %8 : vector<16x128xf32>
    %17 = tpu.reciprocal %16 {approx = true} : vector<16x128xf32> -> vector<16x128xf32>
    %cst_6 = arith.constant 0.000000e+00 : f32
    %18 = vector.broadcast %cst_6 : f32 to vector<16x128xf32>
    %19 = arith.cmpf oge, %3, %18 : vector<16x128xf32>
    %cst_7 = arith.constant 1.000000e+00 : f32
    %20 = vector.broadcast %cst_7 : f32 to vector<16x128xf32>
    %21 = arith.select %19, %20, %8 : vector<16x128xi1>, vector<16x128xf32>
    %22 = arith.mulf %21, %17 : vector<16x128xf32>
    %cst_8 = arith.constant 2.000000e+00 : f32
    %23 = vector.broadcast %cst_8 : f32 to vector<16x128xf32>
    %24 = arith.mulf %23, %22 : vector<16x128xf32>
    %cst_9 = arith.constant 1.000000e+00 : f32
    %25 = vector.broadcast %cst_9 : f32 to vector<16x128xf32>
    %26 = arith.subf %25, %24 : vector<16x128xf32>
    %27 = arith.mulf %4, %26 : vector<16x128xf32>
    %28 = arith.addf %22, %27 : vector<16x128xf32>
    %cst_10 = arith.constant 0.000000e+00 : f32
    %29 = vector.broadcast %cst_10 : f32 to vector<16x128xf32>
    %30 = arith.maximumf %28, %29 : vector<16x128xf32>
    %cst_11 = arith.constant -5.000000e-01 : f32
    %31 = vector.broadcast %cst_11 : f32 to vector<16x128xf32>
    %32 = arith.mulf %4, %31 : vector<16x128xf32>
    %cst_12 = arith.constant 7.500000e-01 : f32
    %33 = vector.broadcast %cst_12 : f32 to vector<16x128xf32>
    %34 = arith.addf %33, %32 : vector<16x128xf32>
    %35 = math.sqrt %30 : vector<16x128xf32>
    %36 = arith.mulf %30, %35 : vector<16x128xf32>
    %37 = arith.mulf %14, %34 : vector<16x128xf32>
    %38 = arith.mulf %37, %36 : vector<16x128xf32>
    %c1_i32 = arith.constant 1 : i32
    %39 = arith.muli %arg0, %c1_i32 : i32
    %40 = arith.addi %39, %arg1 : i32
    %c16_i32 = arith.constant 16 : i32
    %41 = arith.muli %40, %c16_i32 : i32
    %c16_i32_13 = arith.constant 16 : i32
    %42 = arith.addi %41, %c16_i32_13 : i32
    %c16_i32_14 = arith.constant 16 : i32
    %43 = arith.cmpi sle, %42, %c16_i32_14 : i32
    %44 = arith.extui %43 : i1 to i32
    %c0_i32_15 = arith.constant 0 : i32
    %45 = arith.cmpi ne, %44, %c0_i32_15 : i32
    scf.if %45 {
      %c0_17 = arith.constant 0 : index
      %c0_18 = arith.constant 0 : index
      %c0_19 = arith.constant 0 : index
      %49 = vector.load %arg4[%c0_17, %c0_18, %c0_19] : memref<1x8x128xf32, #tpu.memory_space<vmem>>, vector<1x8x128xf32>
      %50 = vector.shape_cast %38 : vector<16x128xf32> to vector<2x8x128xf32>
      %cst_20 = arith.constant dense<0.000000e+00> : vector<8x128xf32>
      %51 = vector.multi_reduction <add>, %50, %cst_20 [0] : vector<2x8x128xf32> to vector<8x128xf32>
      %52 = vector.shape_cast %51 : vector<8x128xf32> to vector<1x8x128xf32>
      %53 = arith.addf %49, %52 : vector<1x8x128xf32>
      %c0_21 = arith.constant 0 : index
      %c0_22 = arith.constant 0 : index
      %c0_23 = arith.constant 0 : index
      %54 = vector.load %arg4[%c0_21, %c0_22, %c0_23] : memref<1x8x128xf32, #tpu.memory_space<vmem>>, vector<1x8x128xf32>
      tpu.vector_store %arg4[%c0_21, %c0_22, %c0_23], %53 {strides = array<i32>} : memref<1x8x128xf32, #tpu.memory_space<vmem>>, vector<1x8x128xf32>,
    } else {
    }
    %true = arith.constant true
    %46 = arith.xori %43, %true : i1
    %47 = arith.extui %46 : i1 to i32
    %c0_i32_16 = arith.constant 0 : i32
    %48 = arith.cmpi ne, %47, %c0_i32_16 : i32
    scf.if %48 {
      %49 = tpu.iota {dimensions = array<i32: 0>} : vector<16x128xi32>
      %50 = vector.broadcast %41 : i32 to vector<16x128xi32>
      %51 = arith.addi %50, %49 : vector<16x128xi32>
      %c0_17 = arith.constant 0 : index
      %c0_18 = arith.constant 0 : index
      %c0_19 = arith.constant 0 : index
      %52 = vector.load %arg4[%c0_17, %c0_18, %c0_19] : memref<1x8x128xf32, #tpu.memory_space<vmem>>, vector<1x8x128xf32>
      %c16_i32_20 = arith.constant 16 : i32
      %53 = vector.broadcast %c16_i32_20 : i32 to vector<16x128xi32>
      %54 = arith.cmpi slt, %51, %53 : vector<16x128xi32>
      %cst_21 = arith.constant 0.000000e+00 : f32
      %55 = vector.broadcast %cst_21 : f32 to vector<16x128xf32>
      %56 = arith.select %54, %38, %55 : vector<16x128xi1>, vector<16x128xf32>
      %57 = vector.shape_cast %56 : vector<16x128xf32> to vector<2x8x128xf32>
      %cst_22 = arith.constant dense<0.000000e+00> : vector<8x128xf32>
      %58 = vector.multi_reduction <add>, %57, %cst_22 [0] : vector<2x8x128xf32> to vector<8x128xf32>
      %59 = vector.shape_cast %58 : vector<8x128xf32> to vector<1x8x128xf32>
      %60 = arith.addf %52, %59 : vector<1x8x128xf32>
      %c0_23 = arith.constant 0 : index
      %c0_24 = arith.constant 0 : index
      %c0_25 = arith.constant 0 : index
      %61 = vector.load %arg4[%c0_23, %c0_24, %c0_25] : memref<1x8x128xf32, #tpu.memory_space<vmem>>, vector<1x8x128xf32>
      tpu.vector_store %arg4[%c0_23, %c0_24, %c0_25], %60 {strides = array<i32>} : memref<1x8x128xf32, #tpu.memory_space<vmem>>, vector<1x8x128xf32>,
    } else {
    }
    return
  }
  func.func @transform_0(%arg0: i32, %arg1: i32) -> (i32, i32) {
    %c1_i32 = arith.constant 1 : i32
    %0 = arith.muli %arg0, %c1_i32 : i32
    %1 = arith.addi %0, %arg1 : i32
    %c0_i32 = arith.constant 0 : i32
    %2 = arith.minsi %1, %c0_i32 : i32
    %c0_i32_0 = arith.constant 0 : i32
    %c0_i32_1 = arith.constant 0 : i32
    return %2, %c0_i32_0 : i32, i32
  }
  func.func @transform_1(%arg0: i32, %arg1: i32) -> (i32, i32) {
    %c1_i32 = arith.constant 1 : i32
    %0 = arith.muli %arg0, %c1_i32 : i32
    %1 = arith.addi %0, %arg1 : i32
    %c0_i32 = arith.constant 0 : i32
    %2 = arith.minsi %1, %c0_i32 : i32
    %c0_i32_0 = arith.constant 0 : i32
    %c0_i32_1 = arith.constant 0 : i32
    return %2, %c0_i32_0 : i32, i32
  }
  func.func @transform_2(%arg0: i32, %arg1: i32) -> (i32, i32, i32) {
    %c0_i32 = arith.constant 0 : i32
    %c0_i32_0 = arith.constant 0 : i32
    %c0_i32_1 = arith.constant 0 : i32
    return %arg0, %c0_i32, %c0_i32_0 : i32, i32, i32
  }
}

</mosaic_0001>

<bundles_post_ra>
// kernel: focal_loss.1
= control target key start
LH: loop header
LB: loop body
LE: loop exit
PB: predicated region body
PF: predicated region fallthrough
CT: control target
= control target key end

     0   :  { %s515_s9 = smov 0   ;;  %s517_s10 = smov 0   ;;  %s597_s0 = inlined_call_operand.vmem [shape: f32[16,128], index: 0, kind: input, shape index: {}]   ;;  %s598_s1 = inlined_call_operand.vmem [shape: f32[16,128], index: 1, kind: input, shape index: {}]   ;;  %s599_s2 = inlined_call_operand.vmem [shape: f32[2,8,128], index: 2, kind: output, shape index: {}]  }
   0x1   :  { %s519_s11 = smov 0  }
   0x2 LB: > { %s24_s12 = sadd.s32 1, %s493_s10  ;;  %p423_p0 = scmp.ge.s32.totalorder %s497_s11, 1  ;;  %s497_s11 = sphi %s519_s11, %s12_s11   ;;  %s493_s10 = sphi %s517_s10, %s605_s10   ;;  %s489_s9 = sphi %s515_s9, %s604_s9  }
   0x3   : > { %p26_p1 = scmp.ge.s32.totalorder %s24_s12, 2  ;;  %p160_p2 = scmp.lt.s32.totalorder %s497_s11, 3 }
   0x5   : > { %s607_s12 = smov (%p26_p1, %s24_s12), 0  ;;  %p161_p3 = pnand %p423_p0, %p160_p2 }
   0x6   : > { %p193_p4 = scmp.lt.s32.totalorder (!%p161_p3), %s489_s9, 0  ;;  %p216_p5 = scmp.lt.s32.totalorder (!%p161_p3), %s489_s9, 1 }
   0x7   : > { %164 = sbr.rel (%p161_p3) target bundleno = 108 (0x6c), region = 28  ;;  %s429_s13 = sshll.u32 (!%p161_p3), %s489_s9, 4 }
   0x8   : > { %s542_s17 = sadd.s32 (!%p161_p3), 16, %s429_s13 }
   0x9   : > { %p430_p7 = scmp.gt.s32.totalorder (!%p161_p3), %s542_s17, 16 }
   0xc   : > { %s194_s14 = scalar_select %p193_p4, %s489_s9, 0  ;;  %v499_v0 = vmov 0.0  }
   0xd   : > { %s217_s15 = scalar_select %p216_p5, %s489_s9, 1 }
   0xe   : > { %s424_s16 = sshll.u32 %s194_s14, 1 }
   0xf   : > { %p196_p6 = scmp.lt.s32.totalorder %s424_s16, 1  ;;  %s428_s18 = sshll.u32 %s217_s15, 3 }
  0x10   : > { %s547_s21 = scalar_lea.vmem %s599_s2, %s428_s18 }
  0x11   : > { %s609_s16 = smov (!%p196_p6, %s424_s16), 1  ;;  %224 = vst [vmem:[%s547_s21] sm:$0xff] %v499_v0 }
  0x12   : > { %s425_s22 = sshll.u32 %s609_s16, 3 }
  0x13   : > { %s199_s25 = scalar_lea.vmem %s597_s0, %s425_s22  ;;  %s211_s28 = scalar_lea.vmem %s598_s1, %s425_s22 }
  0x14   : > { %v553_v1 = vld [vmem:[%s199_s25] sm:$0xff]  ;;  %v555_v2 = vld [vmem:[%s199_s25 + $0x8] sm:$0xff] }
  0x15   : > { %v229_v3 = vand.u32 2147483647, %v553_v1  ;;  %v230_v4 = vand.u32 2147483647, %v555_v2  ;;  %vm267_vm0 = vcmp.ge.f32.partialorder %v553_v1, 0.0  ;;  %vm268_vm1 = vcmp.ge.f32.partialorder %v555_v2, 0.0 }
  0x16   : > { %v227_v20 = vld [vmem:[%s211_s28] sm:$0xff]  ;;  %v228_v22 = vld [vmem:[%s211_s28 + $0x8] sm:$0xff]  ;;  %v237_v41 = vmax.f32 %v553_v1, 0.0  ;;  %v238_v42 = vmax.f32 %v555_v2, 0.0 }
  0x17   : > { %v231_v5 = vsub.f32 0.0, %v229_v3  ;;  %v232_v6 = vsub.f32 0.0, %v230_v4  ;;  %v239_v43 = vmul.f32 %v227_v20, %v553_v1  ;;  %v240_v45 = vmul.f32 %v228_v22, %v555_v2 }
  0x18   : > { %v283_v56 = vmul.f32 -0.5, %v227_v20  ;;  %v284_v57 = vmul.f32 -0.5, %v228_v22 }
  0x19   : > { %v233_v7 = vmul.f32 1.442695, %v231_v5  ;;  %v235_v8 = vmul.f32 1.442695, %v232_v6  ;;  %v241_v55 = vsub.f32 %v237_v41, %v239_v43  ;;  %v242_v59 = vsub.f32 %v238_v42, %v240_v45 }
  0x1a   : > { %v285_v2 = vadd.f32 0.75, %v283_v56  ;;  %v286_v3 = vadd.f32 0.75, %v284_v57 }
  0x1b   : > { %459 = vpow2.f32 %v233_v7 }
  0x1c   : > { %461 = vpow2.f32 %v235_v8 }
  0x21   : > { %v460_v9 = vpop.eup %459 }
  0x22   : > { %v462_v10 = vpop.eup %461  ;;  %v243_v11 = vadd.f32 1.0, %v460_v9  ;;  %v269_v13 = vsel %vm267_vm0, 1.0, %v460_v9  ;;  %v246_v31 = vmul.f32 -0.5, %v460_v9  ;;  %v249_v36 = vand.u32 2147483647, %v460_v9 }
  0x23   : > { %v252_v12 = vadd.f32 1.0, %v462_v10  ;;  %v270_v14 = vsel %vm268_vm1, 1.0, %v462_v10  ;;  %v255_v32 = vmul.f32 -0.5, %v462_v10  ;;  %v258_v39 = vand.u32 2147483647, %v462_v10 }
  0x24   : > { %463 = vrcp.f32 %v243_v11  ;;  %v247_v34 = vadd.f32 1.0, %v246_v31  ;;  %vm568_vm2 = vcmp.lt.f32.partialorder %v249_v36, 0.0004427343 }
  0x25   : > { %465 = vrcp.f32 %v252_v12  ;;  %v256_v37 = vadd.f32 1.0, %v255_v32  ;;  %vm572_vm3 = vcmp.lt.f32.partialorder %v258_v39, 0.0004427343 }
  0x26   : > { %467 = vlog2.f32 %v243_v11  ;;  %v248_v47 = vmul.f32 %v460_v9, %v247_v34 }
  0x27   : > { %469 = vlog2.f32 %v252_v12  ;;  %v257_v51 = vmul.f32 %v462_v10, %v256_v37 }
  0x2a   : > { %v464_v15 = vpop.eup %463 }
  0x2b   : > { %v466_v16 = vpop.eup %465  ;;  %v271_v17 = vmul.f32 %v464_v15, %v269_v13 }
  0x2c   : > { %v272_v18 = vmul.f32 %v466_v16, %v270_v14  ;;  %v468_v33 = vpop.eup %467 }
  0x2d   : > { %v273_v19 = vmul.f32 2.0, %v271_v17  ;;  %v470_v35 = vpop.eup %469  ;;  %v245_v46 = vmul.f32 0.6931472, %v468_v33 }
  0x2e   : > { %v274_v21 = vmul.f32 2.0, %v272_v18  ;;  %v254_v50 = vmul.f32 0.6931472, %v470_v35 }
  0x2f   : > { %v275_v23 = vsub.f32 1.0, %v273_v19  ;;  %v251_v60 = vsel %vm568_vm2, %v248_v47, %v245_v46 }
  0x30   : > { %v276_v24 = vsub.f32 1.0, %v274_v21  ;;  %v260_v62 = vsel %vm572_vm3, %v257_v51, %v254_v50  ;;  %v261_v1 = vadd.f32 %v251_v60, %v241_v55 }
  0x31   : > { %v277_v25 = vmul.f32 %v275_v23, %v227_v20  ;;  %v262_v5 = vadd.f32 %v260_v62, %v242_v59 }
  0x32   : > { %v278_v26 = vmul.f32 %v276_v24, %v228_v22  ;;  %v313_v12 = vmul.f32 %v285_v2, %v261_v1 }
  0x33   : > { %v279_v27 = vadd.f32 %v277_v25, %v271_v17  ;;  %v314_v15 = vmul.f32 %v286_v3, %v262_v5 }
  0x34   : > { %v280_v28 = vadd.f32 %v278_v26, %v272_v18 }
  0x35   : > { %v281_v29 = vmax.f32 %v279_v27, 0.0 }
  0x36   : > { %v282_v30 = vmax.f32 %v280_v28, 0.0 }
  0x37   : > { %471 = vrsqrt.f32 %v281_v29  ;;  %vm294_vm4 = vcmp.eq.f32.partialorder %v281_v29, inf  ;;  %v297_v6 = vand.u32 2147483648, %v281_v29  ;;  %vm296_vm5 = vcmp.eq.f32.partialorder %v281_v29, 0.0 }
  0x38   : > { %473 = vrsqrt.f32 %v282_v30  ;;  %vm306_vm6 = vcmp.eq.f32.partialorder %v282_v30, inf  ;;  %v309_v9 = vand.u32 2147483648, %v282_v30  ;;  %vm308_vm7 = vcmp.eq.f32.partialorder %v282_v30, 0.0 }
  0x3d   : > { %v472_v38 = vpop.eup %471 }
  0x3e   : > { %v474_v40 = vpop.eup %473  ;;  %v288_v44 = vmul.f32 %v472_v38, %v281_v29 }
  0x3f   : > { %v300_v48 = vmul.f32 %v474_v40, %v282_v30 }
  0x40   : > { %v289_v52 = vmul.f32 %v472_v38, %v288_v44 }
  0x41   : > { %v301_v54 = vmul.f32 %v474_v40, %v300_v48 }
  0x42   : > { %v290_v58 = vmul.f32 0.5, %v289_v52 }
  0x43   : > { %v302_v61 = vmul.f32 0.5, %v301_v54 }
  0x44   : > { %v291_v63 = vsub.f32 1.5, %v290_v58 }
  0x45   : > { %v303_v0 = vsub.f32 1.5, %v302_v61 }
  0x46   : > { %v292_v4 = vmul.f32 %v472_v38, %v291_v63 }
  0x47   : > { %v304_v7 = vmul.f32 %v474_v40, %v303_v0 }
  0x48   : > { %v293_v8 = vmul.f32 %v292_v4, %v281_v29 }
  0x49   : > { %v305_v10 = vmul.f32 %v304_v7, %v282_v30 }
  0x4a   : > { %v295_v11 = vsel %vm294_vm4, %v281_v29, %v293_v8 }
  0x4b   : > { %v298_v13 = vsel %vm296_vm5, %v297_v6, %v295_v11  ;;  %v307_v14 = vsel %vm306_vm6, %v282_v30, %v305_v10  ;;  %323 = sbr.rel (%p430_p7) target bundleno = 86 (0x56), region = 36 }
  0x4c   : > { %v310_v16 = vsel %vm308_vm7, %v309_v9, %v307_v14  ;;  %v311_v17 = vmul.f32 %v298_v13, %v281_v29 }
  0x4d   : > { %v312_v18 = vmul.f32 %v310_v16, %v282_v30 }
  0x4e   : > { %v315_v19 = vmul.f32 %v313_v12, %v311_v17 }
  0x4f   : > { %v316_v20 = vmul.f32 %v314_v15, %v312_v18 }
  0x50   : > { %v324_v21 = vld [vmem:[%s547_s21] sm:$0xff] }
  0x51   : > { %v325_v22 = vadd.f32 %v316_v20, %v315_v19 }
  0x53   : > { %v326_v23 = vadd.f32 %v325_v22, %v324_v21 }
  0x55   : > { %327 = vst [vmem:[%s547_s21] sm:$0xff] %v326_v23 }
  0x56 PF: > { %p431_p8 = scmp.le.s32.totalorder %s542_s17, 16 }
  0x58   : > { %331 = sbr.rel (%p431_p8) target bundleno = 108 (0x6c), region = 40 }
  0x5d   : > { %v332_v24 = vlaneseq  ;;  %v335_v25 = vstv %s429_s13  ;;  %v338_v31 = vld [vmem:[%s547_s21] sm:$0xff] }
  0x5f   : > { %v333_v26 = vshrl.u32 %v332_v24, 7 }
  0x61   : > { %v334_v27 = vadd.s32 8, %v333_v26  ;;  %v336_v28 = vadd.s32 %v335_v25, %v333_v26 }
  0x63   : > { %v337_v29 = vadd.s32 %v335_v25, %v334_v27  ;;  %vm339_vm8 = vcmp.lt.s32.totalorder %v336_v28, 16 }
  0x64   : > { %v341_v30 = vsel %vm339_vm8, %v315_v19, 0.0 }
  0x65   : > { %vm340_vm9 = vcmp.lt.s32.totalorder %v337_v29, 16 }
  0x66   : > { %v342_v32 = vsel %vm340_vm9, %v316_v20, 0.0 }
  0x67   : > { %v343_v33 = vadd.f32 %v342_v32, %v341_v30 }
  0x69   : > { %v344_v34 = vadd.f32 %v343_v33, %v338_v31 }
  0x6b   : > { %345 = vst [vmem:[%s547_s21] sm:$0xff] %v344_v34 }
  0x6c PF: > { %s12_s11 = sadd.s32 1, %s497_s11   ;;  %s604_s9 = smov %s493_s10 }
  0x6d   : > { %p9_p9 = scmp.ge.s32.totalorder %s12_s11, 4   ;;  %s605_s10 = smov %s607_s12 }
  0x6f   :  { %11 = sbr.rel (!%p9_p9) target bundleno = 2 (0x2), region = 73 }

</bundles_post_ra>
